<compile_context>
chip_gen: v5e
topology: v5e:2x2
jax: 0.10.0
libtpu: 0.0.40
codegen_flags: <defaults>
</compile_context>

<pallas_src>
import functools
import math

import jax
import jax.numpy as jnp
from jax.experimental import pallas as pl
from jax.experimental.pallas import tpu as pltpu


_BLOCK_BYTE_BUDGET = 4 << 20        # per-stream block target (safe on v7x's 64 MiB VMEM)
_PE_RESIDENT_BYTE_LIMIT = 4 << 20   # keep the PE slab resident in VMEM below this


def _round_up(n, m):
    return ((n + m - 1) // m) * m


def _pe_add_kernel(x_ref, pe_ref, out_ref, *, scale, tr, n_p_tiles, pe_resident):
    # x_ref:  (tr, L)   input rows
    # pe_ref: (Rp, L)   resident PE slab   -- or (tr, L) per-tile fallback
    # out_ref:(tr, L)
    if pe_resident and n_p_tiles > 1:
        t = pl.program_id(0)
        row0 = pl.multiple_of((t % n_p_tiles) * tr, 8)
        pe_blk = pe_ref[pl.ds(row0, tr), :]
    else:
        pe_blk = pe_ref[...]
    out_ref[...] = (
        x_ref[...].astype(jnp.float32) * jnp.float32(scale)
        + pe_blk.astype(jnp.float32)
    ).astype(out_ref.dtype)


def _pick_row_tile(r_period, r_total, lane, itemsize):
    """Largest multiple-of-8 divisor of r_period within the block byte budget,
    shrunk (when possible) so the grid has >= 2 steps (v7x megacore)."""
    divs = [d for d in range(8, r_period + 1, 8) if r_period % d == 0]
    tr = 8
    for d in divs:
        if d * lane * itemsize <= _BLOCK_BYTE_BUDGET:
            tr = max(tr, d)
    while r_total // tr < 2:
        smaller = [d for d in divs if d < tr]
        if not smaller:
            break
        tr = max(smaller)
    return tr


def positional_encoding_forward(x, pe):
    """x: [B, S, E]; pe: [max_len, E] float32 -> [B, S, E] (x.dtype), eval-mode."""
    B, S, E = x.shape
    assert pe.shape[0] >= S and pe.shape[1] == E, "pe table too small for input"
    itemsize = jnp.dtype(x.dtype).itemsize
    scale = math.sqrt(E)

    # Lane-dense packing: k tokens per row so the lane width is a multiple of
    # 128 (unmasked stores), with bounded sequence padding.
    g = math.gcd(E, 128)
    k = 128 // g
    s_base = _round_up(S, 8)
    s_packed = _round_up(S, 8 * k)
    if k == 1 or s_packed <= 4 * s_base:
        S_pad = s_packed
    else:
        k = 1                       # lane-sparse fallback (masked stores, still correct)
        S_pad = s_base
    L = k * E                       # lane width of the 2-D slab
    Rp = S_pad // k                 # PE period in slab rows
    R = B * Rp                      # total slab rows

    # Pad the sequence axis; cast PE to x.dtype (single read when resident).
    pe_rows = pe[:S].astype(x.dtype)
    if S_pad != S:
        x = jnp.pad(x, ((0, 0), (0, S_pad - S), (0, 0)))
        pe_rows = jnp.pad(pe_rows, ((0, S_pad - S), (0, 0)))
    x2 = x.reshape(R, L)
    pe2 = pe_rows.reshape(Rp, L)

    # Tiling + PE residency.
    tr = _pick_row_tile(Rp, R, L, itemsize)
    n_p_tiles = Rp // tr
    pe_resident = (Rp * L * itemsize) <= _PE_RESIDENT_BYTE_LIMIT

    if pe_resident:
        pe_spec = pl.BlockSpec((Rp, L), lambda t: (0, 0))            # fetched once
    else:
        pe_spec = pl.BlockSpec((tr, L), lambda t: (t % n_p_tiles, 0))  # per-tile fallback

    grid = (R // tr,)

    blk = tr * L * itemsize
    pe_bytes = (Rp if pe_resident else tr) * L * itemsize
    vmem_limit = int(min(max(2 * (2 * blk + pe_bytes) + (2 << 20), 16 << 20), 44 << 20))

    kernel = functools.partial(
        _pe_add_kernel, scale=scale, tr=tr, n_p_tiles=n_p_tiles,
        pe_resident=pe_resident)

    out2 = pl.pallas_call(
        kernel,
        out_shape=jax.ShapeDtypeStruct((R, L), x.dtype),
        grid_spec=pltpu.PrefetchScalarGridSpec(
            num_scalar_prefetch=0,
            grid=grid,
            in_specs=[pl.BlockSpec((tr, L), lambda t: (t, 0)), pe_spec],
            out_specs=pl.BlockSpec((tr, L), lambda t: (t, 0)),
        ),
        compiler_params=pltpu.CompilerParams(
            dimension_semantics=("parallel",),
            vmem_limit_bytes=vmem_limit,
        ),
    )(x2, pe2)

    out = out2.reshape(B, S_pad, E)
    return out[:, :S, :] if S_pad != S else out


def make_positional_encoding(max_len, emb_size):
    """Matches PositionalEncoding.__init__ exactly (full max_len buffer)."""
    assert emb_size % 2 == 0, "emb_size must be even (sin/cos interleave)"
    positions = jnp.arange(0, max_len, dtype=jnp.float32)[:, None]            # (L, 1)
    div_term = 10000.0 ** (
        jnp.arange(0, emb_size, 2, dtype=jnp.float32) / emb_size
    )                                                                         # (E/2,)
    angles = positions / div_term                                             # (L, E/2)
    pe = jnp.zeros((max_len, emb_size), dtype=jnp.float32)
    pe = pe.at[:, 0::2].set(jnp.sin(angles))
    pe = pe.at[:, 1::2].set(jnp.cos(angles))
    return pe


if __name__ == "__main__":
    MAX_LEN = 5000
    key = jax.random.PRNGKey(0)
    k0, k1, k2 = jax.random.split(key, 3)

    def ref_fwd(x, pe):
        S = x.shape[1]
        return x * jnp.float32(math.sqrt(x.shape[-1])) + pe[None, :S, :x.shape[-1]]

    # Case 1: small embedded sequence [B, S, E] (E < 128 -> lane-dense packing).
    B, S, E = 2, 8, 32
    pe32 = make_positional_encoding(MAX_LEN, E)
    x = jax.random.normal(k0, (B, S, E), dtype=jnp.float32)
    out = jax.block_until_ready(positional_encoding_forward(x, pe32))
    assert out.shape == (B, S, E)
    assert jnp.allclose(out, ref_fwd(x, pe32), atol=1e-5, rtol=1e-5), "case 1 mismatch"

    # Case 2: ragged sequence length (exercises sequence padding path).
    x_r = jax.random.normal(k1, (B, 7, E), dtype=jnp.float32)
    out_r = jax.block_until_ready(positional_encoding_forward(x_r, pe32))
    assert jnp.allclose(out_r, ref_fwd(x_r, pe32), atol=1e-5, rtol=1e-5), "case 2 mismatch"

    # Case 3: B=1, E multiple of 128 (exercises resident-PE in-kernel slicing
    # and the megacore grid>=2 shrink).
    pe128 = make_positional_encoding(MAX_LEN, 128)
    x_b1 = jax.random.normal(k2, (1, 64, 128), dtype=jnp.float32)
    out_b1 = jax.block_until_ready(positional_encoding_forward(x_b1, pe128))
    assert jnp.allclose(out_b1, ref_fwd(x_b1, pe128), atol=1e-5, rtol=1e-5), "case 3 mismatch"

    print("KERNEL_OK")
</pallas_src>

<mosaic_0001>
module attributes {stable_mosaic.version = 11 : i64} {
  func.func @_pe_add_kernel(%arg0: i32, %arg1: memref<8x128xf32, #tpu.memory_space<vmem>>, %arg2: memref<8x128xf32, #tpu.memory_space<vmem>>, %arg3: memref<8x128xf32, #tpu.memory_space<vmem>>) attributes {dimension_semantics = [#tpu.dimension_semantics<parallel>], iteration_bounds = array<i64: 2>, scalar_prefetch = 0 : i64, scratch_operands = 0 : i64, tpu.core_type = #tpu.core_type<tc>, window_params = [{transform_indices = @transform_0, window_bounds = array<i64: 8, 128>}, {pipeline_mode = #tpu.pipeline_mode<synchronous>, transform_indices = @transform_1, window_bounds = array<i64: 8, 128>}, {transform_indices = @transform_2, window_bounds = array<i64: 8, 128>}]} {
    %c0 = arith.constant 0 : index
    %c0_0 = arith.constant 0 : index
    %0 = vector.load %arg2[%c0, %c0_0] : memref<8x128xf32, #tpu.memory_space<vmem>>, vector<8x128xf32>
    %c0_1 = arith.constant 0 : index
    %c0_2 = arith.constant 0 : index
    %1 = vector.load %arg1[%c0_1, %c0_2] : memref<8x128xf32, #tpu.memory_space<vmem>>, vector<8x128xf32>
    %cst = arith.constant 5.65685415 : f32
    %2 = vector.broadcast %cst : f32 to vector<8x128xf32>
    %3 = arith.mulf %1, %2 : vector<8x128xf32>
    %4 = arith.addf %3, %0 : vector<8x128xf32>
    %c0_3 = arith.constant 0 : index
    %c0_4 = arith.constant 0 : index
    %5 = vector.load %arg3[%c0_3, %c0_4] : memref<8x128xf32, #tpu.memory_space<vmem>>, vector<8x128xf32>
    tpu.vector_store %arg3[%c0_3, %c0_4], %4 {strides = array<i32>} : memref<8x128xf32, #tpu.memory_space<vmem>>, vector<8x128xf32>,
    return
  }
  func.func @transform_0(%arg0: i32) -> (i32, i32) {
    %c0_i32 = arith.constant 0 : i32
    %c0_i32_0 = arith.constant 0 : i32
    return %arg0, %c0_i32 : i32, i32
  }
  func.func @transform_1(%arg0: i32) -> (i32, i32) {
    %c0_i32 = arith.constant 0 : i32
    %c0_i32_0 = arith.constant 0 : i32
    %c0_i32_1 = arith.constant 0 : i32
    return %c0_i32, %c0_i32_0 : i32, i32
  }
  func.func @transform_2(%arg0: i32) -> (i32, i32) {
    %c0_i32 = arith.constant 0 : i32
    %c0_i32_0 = arith.constant 0 : i32
    return %arg0, %c0_i32 : i32, i32
  }
}

</mosaic_0001>

<bundles_post_ra>
// kernel: tpu_custom_call.1
= control target key start
LH: loop header
LB: loop body
LE: loop exit
PB: predicated region body
PF: predicated region fallthrough
CT: control target
= control target key end

     0   :  { %7 = vsyncpa [#allocation3], 0  ;;  %s634_s0 = inlined_call_operand.hbm [shape: f32[16,128], index: 0, kind: input, shape index: {}]   ;;  %s635_s1 = inlined_call_operand.hbm [shape: f32[8,128], index: 1, kind: input, shape index: {}]   ;;  %s636_s2 = inlined_call_operand.hbm [shape: f32[16,128], index: 2, kind: output, shape index: {}]  }
   0x1   :  { %9 = vsyncpa [#allocation3 + $0x1], 0 }
   0x2   :  { %10 = vsyncpa [#allocation6], 0 }
   0x3   :  { %11 = vsyncpa [#allocation4], 0 }
   0x4   :  { %13 = vsyncpa [#allocation4 + $0x1], 0  ;;  %s496_s9 = smov 0   ;;  %s498_s10 = smov 0  }
   0x5   :  { %s500_s11 = smov 0   ;;  %s502_s12 = smov 0  }
   0x6 LB: > { %s517_s13 = sadd.s32 4294967295, %s478_s12   ;;  %s277_s14 = sadd.s32 4294967294, %s478_s12   ;;  %s478_s12 = sphi %s502_s12, %s646_s12   ;;  %s474_s11 = sphi %s500_s11, %s645_s11   ;;  %s470_s10 = sphi %s498_s10, %s644_s10   ;;  %s466_s9 = sphi %s496_s9, %s643_s9  }
   0x7   : > { %p39_p0 = scmp.ne.s32.totalorder %s470_s10, %s466_s9  ;;  %p40_p1 = scmp.eq.s32.totalorder %s517_s13, 0 }
   0x8   : > { %p84_p2 = scmp.eq.s32.totalorder %s517_s13, 1  ;;  %p90_p3 = scmp.eq.s32.totalorder %s277_s14, 1 }
   0x9   : > { %p526_p4 = por %p40_p1, %p39_p0  ;;  %p278_p5 = scmp.ge.s32.totalorder %s478_s12, 1 }
   0xa   : > { %p531_p6 = por %p90_p3, %p39_p0  ;;  %p97_p7 = scmp.lt.s32.totalorder %s478_s12, 3 }
   0xb   : > { %s109_s19 = sshll.u32 %s635_s1, 4  ;;  %s480_s21 = smov [#allocation5]   ;;  %s110_s19 = int_to_ptr.hbm [resolvable:$true] %s109_s19 }
   0xc   : > { %p539_p8 = pnand %p278_p5, %p97_p7  ;;  %s111_s22 = sshll.u32 %s480_s21, 4  ;;  %s112_s22 = int_to_ptr.vmem [resolvable:$true] %s111_s22 }
   0xd   : > { %s549_s23 = sadd.s32 1, %s478_s12   ;;  %s26_s24 = sadd.s32 1, %s474_s11 }
   0xe   : > { %p299_p10 = pneg %p539_p8  ;;  %s23_s25 = ssub.s32 %s478_s12, %s549_s23 }
   0xf   : > { %p24_p12 = scmp.eq.s32.totalorder %s23_s25, 0  ;;  %p33_p13 = scmp.ne.s32.totalorder %s474_s11, %s470_s10 }
  0x10   : > { %p300_p11 = pnand %p299_p10, %p40_p1  ;;  %p34_p0 = scmp.eq.s32.totalorder %s478_s12, 0 }
  0x11   : > { %s558_s26 = scalar_select %p24_p12, %s474_s11, %s26_s24  }
  0x12   : > { %302 = dma.hbm_to_vmem [thread:$0]  (!%p300_p11), %s110_s19, 128, %s112_s22, [#allocation6]  }
  0x13   : > { %p562_p3 = por %p84_p2, %p33_p13  ;;  %p312_p5 = scmp.lt.s32.totalorder %s478_s12, 2 }
  0x14   : > { %s122_s28 = sand.u32 1, %s474_s11   ;;  %s282_s29 = sshll.u32 %s478_s12, 3 }
  0x15   : > { %p35_p7 = por %p34_p0, %p33_p13  ;;  %s281_s30 = sshll.u32 %s122_s28, 3 }
  0x16   : > { %s130_s5 = scalar_lea.hbm %s634_s0, %s282_s29  ;;  %s126_s7 = scalar_lea.vmem [#allocation2], %s281_s30 }
  0x17   : > { %s132_s6 = sshll.u32 %s130_s5, 4  ;;  %s134_s8 = sshll.u32 %s126_s7, 4  ;;  %s133_s6 = int_to_ptr.hbm [resolvable:$true] %s132_s6  ;;  %s135_s8 = int_to_ptr.vmem [resolvable:$true] %s134_s8 }
  0x18   : > { %p572_p10 = pnand %p312_p5, %p35_p7  ;;  %s123_s17 = scalar_lea.sflag [#allocation3], %s122_s28 }
  0x19   : > { %s378_s18 = sshra.s32 %s133_s6, 4  ;;  %s385_s24 = scalar_lea.hbm %s634_s0, 16  ;;  %s379_s18 = int_to_ptr.hbm [resolvable:$true] %s378_s18 }
  0x1a   : > { %s380_s19 = scalar_lea.hbm %s379_s18, 8  ;;  %p382_p11 = pneg %p572_p10 }
  0x1b   : > { %p381_p2 = scmp.ne.s32.totalorder %s379_s18, %s380_s19  ;;  %p386_p0 = scmp.lt.s32.totalorder %s379_s18, %s634_s0 }
  0x1c   : > { %p387_p5 = scmp.lt.s32.totalorder %s385_s24, %s380_s19 }
  0x1d   : > { %p383_p12 = pnand %p382_p11, %p381_p2 }
  0x1e   : > { %p388_p7 = por %p387_p5, %p386_p0 }
  0x1f   : > { %p384_p13 = pneg %p383_p12 }
  0x21   : > { %p389_p9 = pnand %p388_p7, %p384_p13 }
  0x23   : > { %392 = shalt.err (!%p389_p9)
}
  0x24   : > { %306 = dma.hbm_to_vmem [thread:$0]  (!%p572_p10), %s133_s6, 128, %s135_s8, %s123_s17  }
  0x25   : > { %143 = sbr.rel (%p539_p8) target bundleno = 60 (0x3c), region = 28  ;;  %s589_s28 = sand.u32 (!%p539_p8), 1, %s470_s10  }
  0x26   : > { %s284_s30 = sshll.u32 (!%p539_p8), %s589_s28, 3  ;;  %s146_s3 = scalar_lea.sflag (!%p539_p8), [#allocation3], %s589_s28 }
  0x27   : > { %s149_s4 = scalar_lea.vmem (!%p539_p8), [#allocation2], %s284_s30 }
  0x2a   : > { %453 = dma.done.wait (%p526_p4), %s146_s3, 128  }
  0x2b   : > { %455 = vsyncadd (%p526_p4), %s146_s3, 4294967168 }
  0x2c   : > { %457 = dma.done.wait (%p40_p1), [#allocation6], 128  }
  0x2d   : > { %459 = vsyncadd (%p40_p1), [#allocation6], 4294967168  ;;  %s288_s20 = sshll.u32 %s517_s13, 3  ;;  %v176_v0 = vld [vmem:[#allocation5] sm:$0xff]  ;;  %v177_v1 = vld [vmem:[%s149_s4] sm:$0xff]  ;;  %s175_s8 = scalar_lea.vmem [#allocation7], %s284_s30 }
  0x2e   : > { %s192_s7 = scalar_lea.hbm %s636_s2, %s288_s20  ;;  %s194_s14 = sshll.u32 %s175_s8, 4  ;;  %v178_v2 = vmul.f32 5.656854, %v177_v1  ;;  %s195_s14 = int_to_ptr.vmem [resolvable:$true] %s194_s14 }
  0x2f   : > { %s196_s15 = sshll.u32 %s192_s7, 4  ;;  %s182_s17 = scalar_lea.sflag [#allocation4], %s589_s28  ;;  %s197_s15 = int_to_ptr.hbm [resolvable:$true] %s196_s15 }
  0x30   : > { %v179_v3 = vadd.f32 %v178_v2, %v176_v0  ;;  %s422_s18 = sshra.s32 %s197_s15, 4  ;;  %s428_s22 = scalar_lea.hbm %s636_s2, 16  ;;  %s423_s18 = int_to_ptr.hbm [resolvable:$true] %s422_s18 }
  0x31   : > { %s424_s19 = scalar_lea.hbm %s423_s18, 8  ;;  %p429_p9 = scmp.lt.s32.totalorder %s423_s18, %s636_s2 }
  0x32   : > { %180 = vst [vmem:[%s175_s8] sm:$0xff] %v179_v3  ;;  %p425_p1 = scmp.ne.s32.totalorder %s423_s18, %s424_s19  ;;  %p430_p10 = scmp.lt.s32.totalorder %s428_s22, %s424_s19 }
  0x34   : > { %p426_p4 = pnand %p425_p1, %p562_p3  ;;  %p431_p2 = por %p430_p10, %p429_p9 }
  0x36   : > { %p427_p8 = pneg %p426_p4 }
  0x38   : > { %p432_p11 = pnand %p431_p2, %p427_p8 }
  0x3a   : > { %435 = shalt.err (!%p432_p11)
}
  0x3b   : > { %297 = dma.vmem_to_hbm [thread:$0]  (%p562_p3), %s195_s14, 128, %s197_s15, %s182_s17  }
  0x3c PF: > { %s208_s29 = sand.u32 1, %s466_s9   ;;  %p642_p12 = scmp.ge.s32.totalorder %s478_s12, 2 }
  0x3d   : > { %s209_s28 = scalar_lea.sflag [#allocation4], %s208_s29 }
  0x3e   : > { %p308_p13 = pnand %p642_p12, %p531_p6 }
  0x40   : > { %p309_p0 = pneg %p308_p13 }
  0x42   : > { %461 = dma.done.wait (%p309_p0), %s209_s28, 128  }
  0x43   : > { %463 = vsyncadd (%p309_p0), %s209_s28, 4294967168  ;;  %p16_p5 = scmp.ge.s32.totalorder %s549_s23, 4   ;;  %s643_s9 = smov %s470_s10 }
  0x44   : > { %s644_s10 = smov %s474_s11  ;;  %s645_s11 = smov %s558_s26 }
  0x45   : > { %s646_s12 = smov %s549_s23  ;;  %18 = sbr.rel (!%p16_p5) target bundleno = 6 (0x6), region = 77 }
  0x4a   :  { %215 = vsyncpa [#allocation3], 1 }
  0x4b   :  { %217 = vsyncpa [#allocation3 + $0x1], 1 }
  0x4c   :  { %218 = vsyncpa [#allocation6], 1 }
  0x4d   :  { %219 = vsyncpa [#allocation4], 1 }
  0x4e   :  { %221 = vsyncpa [#allocation4 + $0x1], 1 }

</bundles_post_ra>
